<compile_context>
chip_gen: v5e
topology: v5e:2x2
jax: 0.10.0
libtpu: 0.0.40
codegen_flags: <defaults>
</compile_context>

<pallas_src>
import math
import numpy as np

import jax
import jax.numpy as jnp
from jax.experimental import pallas as pl
from jax.experimental.pallas import tpu as pltpu


def _default_vmem_limit():
    # Conservative on v7x (64 MiB physical VMEM per TC); v5e/v6e have 128 MiB.
    limit = 48 * 1024 * 1024
    try:
        cap = int(pltpu.get_tpu_info().vmem_capacity_bytes)
        limit = min(limit, (cap * 3) // 4)
    except Exception:
        pass
    return limit


_VMEM_LIMIT = _default_vmem_limit()


def _cparams(sem):
    return pltpu.CompilerParams(dimension_semantics=sem,
                                vmem_limit_bytes=_VMEM_LIMIT)


# ----------------------------------------------------------------------------
# Gaussian kernel (sca_utils.get_gaussian_kernel, sd=1.5 -> ksz=7)
# ----------------------------------------------------------------------------
def get_gaussian_kernel(sd=1.5):
    ksz = int(4 * sd + 1)
    assert ksz % 2 == 1
    k1 = np.arange(-(ksz - 1) / 2.0, (ksz + 1) / 2.0)
    g1 = np.exp(-1.0 / (2.0 * sd ** 2) * k1 ** 2) / (math.sqrt(2 * math.pi) * sd)
    K = np.outer(g1, g1)
    K = K / K.sum()
    g1n = (g1 / g1.sum()).astype(np.float32)          # separable 1-D factor
    return K.astype(np.float32), g1n, ksz


def _reflect_idx(i, n):
    """numpy / torch 'reflect' index (no edge duplication)."""
    if n == 1:
        return 0
    period = 2 * (n - 1)
    i = i % period
    return i if i < n else period - i


def _gauss_conv_matrix(n, g1):
    """(n, n) matrix folding reflect padding into the 1-D gaussian conv."""
    ksz = g1.shape[0]
    r = ksz // 2
    M = np.zeros((n, n), np.float32)
    for y in range(n):
        for t in range(ksz):
            M[y, _reflect_idx(y - r + t, n)] += g1[t]
    return M


def _resize_matrix(n_in, n_out, align_corners):
    d = np.arange(n_out, dtype=np.float64)
    if align_corners:
        src = np.zeros_like(d) if n_out == 1 else d * (n_in - 1) / (n_out - 1)
    else:
        src = np.maximum((d + 0.5) * (n_in / n_out) - 0.5, 0.0)
    x0 = np.minimum(np.floor(src).astype(np.int64), n_in - 1)
    x1 = np.minimum(x0 + 1, n_in - 1)
    w1 = src - x0
    w0 = 1.0 - w1
    M = np.zeros((n_out, n_in), np.float32)
    M[np.arange(n_out), x0] += w0.astype(np.float32)
    M[np.arange(n_out), x1] += w1.astype(np.float32)
    return M


def _block_diag(m, n_rep):
    if n_rep == 1:
        return np.asarray(m, np.float32)
    ho, hi = m.shape
    out = np.zeros((n_rep * ho, n_rep * hi), np.float32)
    for i in range(n_rep):
        out[i * ho:(i + 1) * ho, i * hi:(i + 1) * hi] = m
    return out


def _base_grid(Hout, Wout):
    idx = np.arange(Hout * Wout)
    brow = (idx // Wout).astype(np.float32).reshape(1, 1, -1)
    bcol = (idx % Wout).astype(np.float32).reshape(1, 1, -1)
    return jnp.asarray(bcol), jnp.asarray(brow)


# ----------------------------------------------------------------------------
# Pallas kernel 1: alignment conv matmul  (Co, K) @ (K, HW) + bias  per batch.
# bf16 operands (native MXU rate), f32 accumulate; weights/bias shared across
# the batch; grid=(B,) is 'parallel' so v7x can split batches across cores.
# ----------------------------------------------------------------------------
def _conv_mm(patches, w_t, bias):
    B, K, HW = patches.shape
    Co = w_t.shape[0]

    def kernel(p_ref, w_ref, b_ref, o_ref):
        o_ref[...] = jnp.dot(w_ref[...], p_ref[...],
                             preferred_element_type=jnp.float32) + b_ref[...]

    return pl.pallas_call(
        kernel,
        out_shape=jax.ShapeDtypeStruct((B, Co, HW), jnp.float32),
        grid=(B,),
        in_specs=[pl.BlockSpec((None, K, HW), lambda b: (b, 0, 0)),
                  pl.BlockSpec((Co, K), lambda b: (0, 0)),
                  pl.BlockSpec((Co, 1), lambda b: (0, 0))],
        out_specs=pl.BlockSpec((None, Co, HW), lambda b: (b, 0, 0)),
        compiler_params=_cparams(("parallel",)),
    )(patches.astype(jnp.bfloat16), w_t.astype(jnp.bfloat16),
      bias.reshape(Co, 1).astype(jnp.float32))


# ----------------------------------------------------------------------------
# Pallas kernel 2: bilinear warp (grid_sample, zeros padding, bilinear) with a
# SEPARABLE tent:
#   wx[ci, p] = relu(1 - |ci - sx[p]|),  wy[ri, p] = relu(1 - |ri - sy[p]|)
#   out[c, p] = sum_ri wy[ri, p] * ( img[c, ri, :] @ wx[:, p] )
# Per channel: one bf16 MXU matmul over the input columns, then per-row scale
# by wy and a sublane reduce over the input rows.  Out-of-range samples get
# zero weight -> zeros padding for free.
# ----------------------------------------------------------------------------
def _pick_warp_tile(Hout, Wout, Hin, Win, C):
    HWout = Hout * Wout
    # bytes of per-lane-column intermediates (f32 + bf16 copies, generous)
    bytes_per_col = 4 * (2 * Win + 3 * Hin + 4 * C + 16)
    img_bytes = 2 * C * Hin * Win * 4            # double-buffered input block
    budget = 24 * 1024 * 1024
    max_tp = max(128, (budget - img_bytes) // bytes_per_col)
    if HWout <= max_tp:
        return Hout                               # whole output in one tile
    best = None
    for tr in range(1, Hout):
        if Hout % tr != 0:
            continue
        tp = tr * Wout
        if tp > max_tp:
            break
        if tp % 128 == 0:
            best = tr
    if best is None:
        # TODO(synk): for odd Wout pad the output width up to a lane-aligned
        # multiple instead of falling back to a whole-image tile.
        return Hout
    return best


def _warp(img, sx, sy, Hout, Wout):
    """img: (B, C, Hin, Win); sx, sy: (B, 1, Hout*Wout) sample coordinates in
    input-pixel units -> (B, C, Hout*Wout) float32."""
    B, C, Hin, Win = img.shape
    HWout = Hout * Wout
    TR = _pick_warp_tile(Hout, Wout, Hin, Win, C)
    TP = TR * Wout
    nrt = Hout // TR

    # grid-invariant coordinate columns (hoisted out of the kernel)
    col = jnp.arange(Win, dtype=jnp.float32).reshape(Win, 1)
    row = jnp.arange(Hin, dtype=jnp.float32).reshape(Hin, 1)

    def kernel(img_ref, sx_ref, sy_ref, col_ref, row_ref, o_ref):
        # separable tent factors: O((Hin + Win) * TP) VPU work
        wx = jnp.maximum(1.0 - jnp.abs(col_ref[...] - sx_ref[...]), 0.0)  # (Win, TP)
        wy = jnp.maximum(1.0 - jnp.abs(row_ref[...] - sy_ref[...]), 0.0)  # (Hin, TP)
        wxb = wx.astype(jnp.bfloat16)
        for c in range(C):
            # horizontal taps on the MXU: (Hin, Win) @ (Win, TP) -> f32
            t = jnp.dot(img_ref[c].astype(jnp.bfloat16), wxb,
                        preferred_element_type=jnp.float32)
            # vertical taps: per-row scale + sublane reduce, direct row store
            o_ref[c, :] = jnp.sum(t * wy, axis=0)

    return pl.pallas_call(
        kernel,
        out_shape=jax.ShapeDtypeStruct((B, C, HWout), jnp.float32),
        grid=(B, nrt),
        in_specs=[pl.BlockSpec((None, C, Hin, Win), lambda b, r: (b, 0, 0, 0)),
                  pl.BlockSpec((None, 1, TP), lambda b, r: (b, 0, r)),
                  pl.BlockSpec((None, 1, TP), lambda b, r: (b, 0, r)),
                  pl.BlockSpec((Win, 1), lambda b, r: (0, 0)),
                  pl.BlockSpec((Hin, 1), lambda b, r: (0, 0))],
        out_specs=pl.BlockSpec((None, C, TP), lambda b, r: (b, 0, r)),
        compiler_params=_cparams(("parallel", "parallel")),
    )(img.astype(jnp.float32), sx.astype(jnp.float32), sy.astype(jnp.float32),
      col, row)


# ----------------------------------------------------------------------------
# Pallas kernel 3: batched separable matmul  out[i] = L @ x[i] @ R^T
# (used for both bilinear resize and the reflect-folded 7x7 gaussian blur).
# The batch is folded into the row (M) axis with a block-diagonal L so each
# grid step does exactly TWO dots; a leading 'parallel' axis of 2 lets v7x use
# both TensorCores.
# ----------------------------------------------------------------------------
def _batched_sep_matmul(x, left_np, right_t_np):
    """x: (BC, h_in, w_in); left_np: (h_out, h_in); right_t_np: (w_in, w_out)."""
    BC, h_in, w_in = x.shape
    h_out = left_np.shape[0]
    w_out = right_t_np.shape[1]
    n_splits = 2 if (BC % 2 == 0 and BC >= 2) else 1
    n_chunk = BC // n_splits

    bd_left = jnp.asarray(_block_diag(left_np, n_chunk))      # (nc*h_out, nc*h_in)
    right_t = jnp.asarray(np.asarray(right_t_np, np.float32))
    x2 = x.reshape(n_splits, n_chunk * h_in, w_in).astype(jnp.float32)

    def kernel(x_ref, l_ref, r_ref, o_ref):
        tmp = jnp.dot(l_ref[...], x_ref[...], preferred_element_type=jnp.float32)
        o_ref[...] = jnp.dot(tmp, r_ref[...], preferred_element_type=jnp.float32)

    out = pl.pallas_call(
        kernel,
        out_shape=jax.ShapeDtypeStruct((n_splits, n_chunk * h_out, w_out),
                                       jnp.float32),
        grid=(n_splits,),
        in_specs=[pl.BlockSpec((None, n_chunk * h_in, w_in), lambda i: (i, 0, 0)),
                  pl.BlockSpec((n_chunk * h_out, n_chunk * h_in),
                               lambda i: (0, 0)),
                  pl.BlockSpec((w_in, w_out), lambda i: (0, 0))],
        out_specs=pl.BlockSpec((None, n_chunk * h_out, w_out),
                               lambda i: (i, 0, 0)),
        compiler_params=_cparams(("parallel",)),
    )(x2, bd_left, right_t)
    return out.reshape(BC, h_out, w_out)


def _resize(x, ry_np, rx_np):
    """Bilinear resize: x (BC, h_in, w_in) -> (BC, h_out, w_out)."""
    return _batched_sep_matmul(x, ry_np, rx_np.T)


def _gauss_blur(x, g1_np):
    """Separable 7x7 gaussian blur with reflect padding folded into matrices."""
    BC, h, w = x.shape
    ky = _gauss_conv_matrix(h, g1_np)
    kx = _gauss_conv_matrix(w, g1_np)
    return _batched_sep_matmul(x, ky, kx.T)


# ----------------------------------------------------------------------------
# Pallas kernel 4: apply a 3x3 color transform to a lane-dense (3, HW) image:
#   out[j, :] = sum_i c[i, j] * x[i, :]   (broadcast FMAs + direct row stores)
# ----------------------------------------------------------------------------
def _color_apply(x, c_mat):
    """x: (B, 3, N); c_mat: (B, 3, 3) -> (B, 3, N)."""
    B, C, N = x.shape

    def kernel(x_ref, c_ref, o_ref):
        xv = x_ref[...]                 # (3, N)
        cv = c_ref[...]                 # (3, 3)
        for j in range(3):
            o_ref[j, :] = jnp.sum(cv[:, j:j + 1] * xv, axis=0)

    return pl.pallas_call(
        kernel,
        out_shape=jax.ShapeDtypeStruct((B, C, N), jnp.float32),
        grid=(B,),
        in_specs=[pl.BlockSpec((None, C, N), lambda b: (b, 0, 0)),
                  pl.BlockSpec((None, 3, 3), lambda b: (b, 0, 0))],
        out_specs=pl.BlockSpec((None, C, N), lambda b: (b, 0, 0)),
        compiler_params=_cparams(("parallel",)),
    )(x.astype(jnp.float32), c_mat.astype(jnp.float32))


# ----------------------------------------------------------------------------
# Synthetic alignment net: 3x3 conv (6 -> 2), padding=1 (im2col in glue, matmul
# + bias in Pallas).  Output flow is channel-major (B, 2, H*W).
# ----------------------------------------------------------------------------
def _alignment_net(pred_n, gt_n, w_align, b_align):
    # TODO(synk): an in-kernel im2col (9 shifted dots on a resident padded
    # image) would remove the 9x patches duplication in HBM; at these sizes
    # (<1 MiB in bf16) it is not the bottleneck.
    x = jnp.concatenate([pred_n, gt_n], axis=1)                  # (B, 6, H, W)
    B, Ci, H, W = x.shape
    xp = jnp.pad(x, ((0, 0), (0, 0), (1, 1), (1, 1)))
    cols = [xp[:, :, dy:dy + H, dx:dx + W] for dy in range(3) for dx in range(3)]
    patches = jnp.concatenate(cols, axis=1).reshape(B, 9 * Ci, H * W)
    return _conv_mm(patches, w_align.T, b_align)                 # (B, 2, H*W)


# ----------------------------------------------------------------------------
# sca_utils.match_colors (channel-major layouts throughout)
# ----------------------------------------------------------------------------
def _match_colors(im_ref, im_q, im_test_flat, g1_np, H_t, W_t):
    """im_ref, im_q: (B, 3, h, w); im_test_flat: (B, 3, H_t*W_t)."""
    B, C, h, w = im_ref.shape
    bi = 5

    # one blur call for ref + query (BC = 2*B*C)
    both = jnp.concatenate([im_ref, im_q], axis=0).reshape(2 * B * C, h, w)
    blurred = _gauss_blur(both, g1_np).reshape(2, B, C, h, w)
    ref_mean = blurred[0][:, :, bi:-bi, bi:-bi]
    q_mean = blurred[1][:, :, bi:-bi, bi:-bi]
    hc, wc = ref_mean.shape[-2:]
    npix = hc * wc

    A = q_mean.reshape(B, C, npix)                               # (B, 3, N)
    Bm = ref_mean.reshape(B, C, npix)
    # ridge-regularized normal-equations LS (lstsq replacement, tiny glue)
    AtA = jnp.einsum("bin,bjn->bij", A, A) + 1e-6 * jnp.eye(3, dtype=jnp.float32)
    AtB = jnp.einsum("bin,bjn->bij", A, Bm)
    c_mat = jnp.linalg.solve(AtA, AtB)                           # (B, 3, 3)

    q_conv = jnp.einsum("bij,bin->bjn", c_mat, A)                # (B, 3, N)
    err = jnp.linalg.norm((q_conv - Bm) * 255.0, axis=1)         # (B, N)
    valid = (err < 20.0).astype(jnp.float32).reshape(B, hc, wc)

    pad = (w - wc) // 2
    valid = jnp.pad(valid, ((0, 0), (pad, pad), (pad, pad)))     # (B, h, w)

    up = W_t / valid.shape[-1]
    out_h = int(math.floor(valid.shape[-2] * up))
    out_w = int(math.floor(valid.shape[-1] * up))
    ry = _resize_matrix(valid.shape[-2], out_h, align_corners=False)
    rx = _resize_matrix(valid.shape[-1], out_w, align_corners=False)
    valid_up = _resize(valid, ry, rx)                            # (B, out_h, out_w)
    valid_out = (valid_up > 0.9)[:, None, :, :]                  # (B, 1, oh, ow) bool

    im_t_conv = _color_apply(im_test_flat, c_mat).reshape(B, 3, H_t, W_t)
    return im_t_conv, valid_out


# ----------------------------------------------------------------------------
# AlignedPred.forward
# ----------------------------------------------------------------------------
def aligned_pred_forward(pred, gt, burst_input, w_align, b_align,
                         sr_factor=2, boundary_ignore=None):
    _gauss2d, g1_np, _ksz = get_gaussian_kernel(sd=1.5)
    B, C, H, W = pred.shape
    HW = H * W

    # alignment net on normalized inputs (no_grad in the original)
    pred_n = pred / (jnp.max(pred) + 1e-6)
    gt_n = gt / (jnp.max(gt) + 1e-6)
    flow = _alignment_net(pred_n, gt_n, w_align, b_align)        # (B, 2, HW)
    fx, fy = flow[:, 0:1, :], flow[:, 1:2, :]                    # (B, 1, HW)

    # warp prediction with the full-resolution flow (sample coords = grid + flow)
    bcol, brow = _base_grid(H, W)
    pred_warped = _warp(pred, fx + bcol, fy + brow, H, W)        # (B, 3, HW)

    # downsample flow and gt together (shared resize matrices, one call)
    ds_factor = 1.0 / (2.0 * float(sr_factor))
    h_ds = int(math.floor(H * ds_factor))
    w_ds = int(math.floor(W * ds_factor))
    ry = _resize_matrix(H, h_ds, align_corners=True)
    rx = _resize_matrix(W, w_ds, align_corners=True)
    stacked = jnp.concatenate([flow.reshape(B * 2, H, W),
                               gt.reshape(B * 3, H, W)], axis=0)     # (5B, H, W)
    ds = _resize(stacked, ry, rx)                                    # (5B, h, w)
    flow_ds = ds[:B * 2].reshape(B, 2, h_ds * w_ds) * ds_factor
    frame_gt_ds = ds[B * 2:].reshape(B, 3, h_ds, w_ds)
    fx_ds, fy_ds = flow_ds[:, 0:1, :], flow_ds[:, 1:2, :]

    # burst frame 0, channels [0, 1, 3] of the RGGB mosaic, warped with flow_ds
    burst_0 = jnp.take(burst_input[:, 0], jnp.array([0, 1, 3]), axis=1)  # (B,3,h,w)
    hb, wb = burst_0.shape[-2:]
    bcol_ds, brow_ds = _base_grid(h_ds, w_ds)
    burst_0_warped = _warp(burst_0, fx_ds + bcol_ds, fy_ds + brow_ds,
                           h_ds, w_ds).reshape(B, 3, h_ds, w_ds)

    pred_warped_m, valid = _match_colors(frame_gt_ds, burst_0_warped,
                                         pred_warped, g1_np, H, W)

    if boundary_ignore is not None:
        bi = boundary_ignore
        pred_warped_m = pred_warped_m[..., bi:-bi, bi:-bi]
        gt = gt[..., bi:-bi, bi:-bi]
        valid = valid[..., bi:-bi, bi:-bi]
    return pred_warped_m, gt, valid


# ----------------------------------------------------------------------------
if __name__ == "__main__":
    key = jax.random.PRNGKey(0)
    B, H, W = 2, 48, 48
    sr_factor = 2
    h = H // (2 * sr_factor)   # 12
    w = W // (2 * sr_factor)   # 12

    k1, k2, k3, k4 = jax.random.split(key, 4)
    pred = jax.random.uniform(k1, (B, 3, H, W), jnp.float32)
    gt = jax.random.uniform(k2, (B, 3, H, W), jnp.float32)
    burst_input = jax.random.uniform(k3, (B, 4, 4, h, w), jnp.float32)

    # deterministic synthetic alignment-net parameters: Conv2d(6, 2, 3, padding=1)
    w_align = 0.05 * jax.random.normal(k4, (9 * 6, 2), jnp.float32)
    b_align = jnp.zeros((2,), jnp.float32)

    pred_warped_m, gt_out, valid = aligned_pred_forward(
        pred, gt, burst_input, w_align, b_align,
        sr_factor=sr_factor, boundary_ignore=None)
    jax.block_until_ready((pred_warped_m, gt_out, valid))

    assert pred_warped_m.shape == (B, 3, H, W)
    assert gt_out.shape == (B, 3, H, W)
    assert valid.shape == (B, 1, H, W) and valid.dtype == jnp.bool_
    assert bool(jnp.all(jnp.isfinite(pred_warped_m)))
    print("KERNEL_OK")
</pallas_src>

<mosaic_0001>
module attributes {stable_mosaic.version = 11 : i64} {
  func.func @kernel(%arg0: i32, %arg1: memref<1x54x2304xbf16, #tpu.memory_space<vmem>>, %arg2: memref<2x54xbf16, #tpu.memory_space<vmem>>, %arg3: memref<2x1xf32, #tpu.memory_space<vmem>>, %arg4: memref<1x2x2304xf32, #tpu.memory_space<vmem>>) attributes {dimension_semantics = [#tpu.dimension_semantics<parallel>], iteration_bounds = array<i64: 2>, scalar_prefetch = 0 : i64, scratch_operands = 0 : i64, tpu.core_type = #tpu.core_type<tc>, window_params = [{transform_indices = @transform_0, window_bounds = array<i64: 1, 54, 2304>}, {pipeline_mode = #tpu.pipeline_mode<synchronous>, transform_indices = @transform_1, window_bounds = array<i64: 2, 54>}, {pipeline_mode = #tpu.pipeline_mode<synchronous>, transform_indices = @transform_2, window_bounds = array<i64: 2, 1>}, {transform_indices = @transform_3, window_bounds = array<i64: 1, 2, 2304>}]} {
    %c0 = arith.constant 0 : index
    %c0_0 = arith.constant 0 : index
    %0 = vector.load %arg2[%c0, %c0_0] : memref<2x54xbf16, #tpu.memory_space<vmem>>, vector<2x54xbf16>
    %c0_1 = arith.constant 0 : index
    %c0_2 = arith.constant 0 : index
    %c0_3 = arith.constant 0 : index
    %1 = vector.load %arg1[%c0_1, %c0_2, %c0_3] : memref<1x54x2304xbf16, #tpu.memory_space<vmem>>, vector<1x54x2304xbf16>
    %2 = vector.shape_cast %1 : vector<1x54x2304xbf16> to vector<54x2304xbf16>
    %cst = arith.constant dense<0.000000e+00> : vector<2x2304xf32>
    %3 = tpu.matmul %0, %2, %cst {dimension_numbers = #tpu.dot_dimension_numbers<[1], [0], [0], [1], [0, 0, 1, 1], [], []>} : vector<2x54xbf16>, vector<54x2304xbf16>, vector<2x2304xf32> -> vector<2x2304xf32>
    %c0_4 = arith.constant 0 : index
    %c0_5 = arith.constant 0 : index
    %4 = vector.load %arg3[%c0_4, %c0_5] : memref<2x1xf32, #tpu.memory_space<vmem>>, vector<2x1xf32>
    %5 = vector.broadcast %4 : vector<2x1xf32> to vector<2x2304xf32>
    %6 = arith.addf %3, %5 : vector<2x2304xf32>
    %c0_6 = arith.constant 0 : index
    %c0_7 = arith.constant 0 : index
    %c0_8 = arith.constant 0 : index
    %7 = vector.load %arg4[%c0_6, %c0_7, %c0_8] : memref<1x2x2304xf32, #tpu.memory_space<vmem>>, vector<1x2x2304xf32>
    %8 = vector.shape_cast %7 : vector<1x2x2304xf32> to vector<2x2304xf32>
    %9 = vector.shape_cast %6 : vector<2x2304xf32> to vector<1x2x2304xf32>
    tpu.vector_store %arg4[%c0_6, %c0_7, %c0_8], %9 {strides = array<i32>} : memref<1x2x2304xf32, #tpu.memory_space<vmem>>, vector<1x2x2304xf32>,
    return
  }
  func.func @transform_0(%arg0: i32) -> (i32, i32, i32) {
    %c0_i32 = arith.constant 0 : i32
    %c0_i32_0 = arith.constant 0 : i32
    %c0_i32_1 = arith.constant 0 : i32
    return %arg0, %c0_i32, %c0_i32_0 : i32, i32, i32
  }
  func.func @transform_1(%arg0: i32) -> (i32, i32) {
    %c0_i32 = arith.constant 0 : i32
    %c0_i32_0 = arith.constant 0 : i32
    %c0_i32_1 = arith.constant 0 : i32
    return %c0_i32, %c0_i32_0 : i32, i32
  }
  func.func @transform_2(%arg0: i32) -> (i32, i32) {
    %c0_i32 = arith.constant 0 : i32
    %c0_i32_0 = arith.constant 0 : i32
    %c0_i32_1 = arith.constant 0 : i32
    return %c0_i32, %c0_i32_0 : i32, i32
  }
  func.func @transform_3(%arg0: i32) -> (i32, i32, i32) {
    %c0_i32 = arith.constant 0 : i32
    %c0_i32_0 = arith.constant 0 : i32
    %c0_i32_1 = arith.constant 0 : i32
    return %arg0, %c0_i32, %c0_i32_0 : i32, i32, i32
  }
}

</mosaic_0001>

<bundles_post_ra>
// kernel: tpu_custom_call.1
= control target key start
LH: loop header
LB: loop body
LE: loop exit
PB: predicated region body
PF: predicated region fallthrough
CT: control target
= control target key end

     0   :  { %8 = vsyncpa [#allocation3], 0  ;;  %s1717_s0 = inlined_call_operand.vmem [shape: bf16[2,54,2304], index: 0, kind: input, shape index: {}]   ;;  %s1718_s1 = inlined_call_operand.vmem [shape: bf16[2,54], index: 1, kind: input, shape index: {}]   ;;  %s1719_s2 = inlined_call_operand.vmem [shape: f32[2,1], index: 2, kind: input, shape index: {}]   ;;  %s1720_s3 = inlined_call_operand.hbm [shape: f32[2,2,2304], index: 3, kind: output, shape index: {}]  }
   0x1   :  { %10 = vsyncpa [#allocation3 + $0x1], 0  ;;  %s1406_s12 = smov 0   ;;  %s1408_s13 = smov 0  }
   0x2   :  { %s1410_s14 = smov 0   ;;  %s1412_s15 = smov 0  }
   0x3 LB: > { %s1427_s16 = sadd.s32 4294967295, %s1383_s15   ;;  %s981_s17 = sadd.s32 4294967294, %s1383_s15   ;;  %s1383_s15 = sphi %s1412_s15, %s1726_s15   ;;  %s1379_s14 = sphi %s1410_s14, %s1725_s14   ;;  %s1375_s13 = sphi %s1408_s13, %s1724_s13   ;;  %s1371_s12 = sphi %s1406_s12, %s1723_s12  }
   0x4   : > { %s1431_s18 = sadd.s32 1, %s1383_s15   ;;  %s91_s19 = sadd.s32 1, %s1379_s14 }
   0x5   : > { %s88_s20 = ssub.s32 %s1383_s15, %s1431_s18  ;;  %p101_p0 = scmp.ne.s32.totalorder %s1379_s14, %s1375_s13 }
   0x6   : > { %p89_p1 = scmp.eq.s32.totalorder %s88_s20, 0  ;;  %p102_p2 = scmp.eq.s32.totalorder %s1427_s16, 1 }
   0x7   : > { %p107_p3 = scmp.ne.s32.totalorder %s1375_s13, %s1371_s12  ;;  %p108_p4 = scmp.eq.s32.totalorder %s981_s17, 1 }
   0x8   : > { %s1442_s21 = scalar_select %p89_p1, %s1379_s14, %s91_s19  }
   0x9   : > { %p1444_p5 = por %p102_p2, %p101_p0  ;;  %p1448_p6 = por %p108_p4, %p107_p3 }
   0xa   : > { %p984_p7 = scmp.ge.s32.totalorder %s1383_s15, 1  ;;  %p140_p8 = scmp.lt.s32.totalorder %s1383_s15, 3 }
   0xc   : > { %p141_p9 = pnand %p984_p7, %p140_p8 }
   0xd   : > { %p164_p10 = scmp.lt.s32.totalorder (!%p141_p9), %s1427_s16, 1  ;;  %s161_s6 = sand.u32 (!%p141_p9), 1, %s1375_s13  }
   0xe   : > { %144 = sbr.rel (%p141_p9) target bundleno = 244 (0xf4), region = 32  ;;  %s906_s20 = scalar_lea.sflag (!%p141_p9), [#allocation3], %s161_s6 }
   0xf   : > { %s1277_s7 = smul.u32 (!%p141_p9), 36, %s161_s6 }
  0x10   : > { %s1279_s9 = smul.u32 (!%p141_p9), 36, %s1427_s16 }
  0x11   : > { %s1652_s8 = scalar_lea.vmem (!%p141_p9), [#allocation2], %s1277_s7 }
  0x12   : > { %s917_s17 = scalar_lea.hbm (!%p141_p9), %s1720_s3, %s1279_s9 }
  0x13   : > { %s165_s24 = scalar_select %p164_p10, %s1427_s16, 1  ;;  %v234_v0 = vld [vmem:[%s1719_s2] sm:$0x3]  ;;  %v1385_v3 = vmov 0   ;;  %vm559_vm0 = vcmask 1042432   ;;  %vm555_vm1 = vcmask 441344  }
  0x14   : > { %1320 = vset.pattern.permute.xlu0 %v1385_v3  ;;  %vm879_vm2 = vcmask 1041408   ;;  %vm881_vm3 = vcmask 1045508   ;;  %vm883_vm4 = vcmask 1043456   ;;  %s919_s16 = sshll.u32 %s1652_s8, 4  ;;  %s921_s19 = sshll.u32 %s917_s17, 4  ;;  %s920_s16 = int_to_ptr.vmem [resolvable:$true] %s919_s16  ;;  %s922_s19 = int_to_ptr.hbm [resolvable:$true] %s921_s19 }
  0x15   : > { %s1278_s25 = smul.u32 504, %s165_s24  ;;  %237 = vperm.xlu0 %1320, %v234_v0   ;;  %s1335_s24 = sshra.s32 %s922_s19, 4  ;;  %s1336_s24 = int_to_ptr.hbm [resolvable:$true] %s1335_s24 }
  0x16   : > { %p1342_p0 = scmp.lt.s32.totalorder %s1336_s24, %s1720_s3 }
  0x17   : > { %s1459_s28 = scalar_lea.vmem %s1717_s0, %s1278_s25  ;;  %s1337_s25 = scalar_lea.hbm %s1336_s24, 36 }
  0x18   : > { %v225_v1 = vld [vmem:[%s1459_s28 + $0x1b0] sm:$0x77]  ;;  %v226_v2 = vld [vmem:[%s1459_s28 + $0x1b8] sm:$0x77]  ;;  %v1132_v8 = vld [vmem:[%s1459_s28 + $0x120] sm:$0xf]  ;;  %p1338_p11 = scmp.ne.s32.totalorder %s1336_s24, %s1337_s25 }
  0x19   : > { %v411_v4 = vunpack.c.l.b16 %v225_v1  ;;  %v412_v5 = vunpack.c.h.b16 %v225_v1  ;;  %v413_v6 = vunpack.c.l.b16 %v226_v2  ;;  %v414_v7 = vunpack.c.h.b16 %v226_v2  ;;  %v1268_v9 = vld [vmem:[%s1459_s28 + $0x164] sm:$0xf0]  ;;  %v1259_v14 = vld [vmem:[%s1459_s28 + $0x124] sm:$0xf]  ;;  %v1134_v15 = vld [vmem:[%s1459_s28 + $0x168] sm:$0xf0] }
  0x1a   : > { %v1140_v16 = vld [vmem:[%s1459_s28 + $0x128] sm:$0xf]  ;;  %v1269_v17 = vld [vmem:[%s1459_s28 + $0x16c] sm:$0xf0]  ;;  %v1260_v18 = vld [vmem:[%s1459_s28 + $0x12c] sm:$0xf]  ;;  %v1133_v24 = vor.u32 %v1268_v9, %v1132_v8  ;;  %v1137_v25 = vor.u32 %v1259_v14, %v1134_v15  ;;  %p1339_p12 = pnand %p1338_p11, %p1444_p5 }
  0x1b   : > { %v483_v10 = vpack.c.b16 %v411_v4, %v411_v4  ;;  %v484_v11 = vpack.c.b16 %v412_v5, %v412_v5  ;;  %v485_v12 = vpack.c.b16 %v413_v6, %v413_v6  ;;  %v486_v13 = vpack.c.b16 %v414_v7, %v414_v7  ;;  %v1142_v19 = vld [vmem:[%s1459_s28 + $0x170] sm:$0xf0]  ;;  %v1060_v26 = vld [vmem:[%s1459_s28 + $0x90] sm:$0xf]  ;;  %v1250_v27 = vld [vmem:[%s1459_s28 + $0xd4] sm:$0xf0] }
  0x1c   : > { %v1141_v28 = vor.u32 %v1269_v17, %v1140_v16  ;;  %v1145_v29 = vor.u32 %v1260_v18, %v1142_v19  ;;  %v1241_v30 = vld [vmem:[%s1459_s28 + $0x94] sm:$0xf]  ;;  %v1062_v31 = vld [vmem:[%s1459_s28 + $0xd8] sm:$0xf0]  ;;  %v1068_v32 = vld [vmem:[%s1459_s28 + $0x98] sm:$0xf]  ;;  %v1061_v38 = vor.u32 %v1250_v27, %v1060_v26  ;;  %p1340_p13 = pneg %p1339_p12 }
  0x1d   : > { %v561_v20 = vsel %vm559_vm0, %v483_v10, 0  ;;  %v564_v21 = vsel %vm559_vm0, %v484_v11, 0  ;;  %v567_v22 = vsel %vm559_vm0, %v485_v12, 0  ;;  %v570_v23 = vsel %vm559_vm0, %v486_v13, 0  ;;  %v1251_v33 = vld [vmem:[%s1459_s28 + $0xdc] sm:$0xf0] }
  0x1e   : > { %618 = vmatpush.bf16.msra.mxu0 %v561_v20  ;;  %631 = vmatpush.bf16.msra.mxu1 %v564_v21  ;;  %v1242_v34 = vld [vmem:[%s1459_s28 + $0x9c] sm:$0xf]  ;;  %v1070_v35 = vld [vmem:[%s1459_s28 + $0xe0] sm:$0xf0]  ;;  %v228_v37 = vld [vmem:[%s1459_s28 + $0x1c8] sm:$0x77]  ;;  %v1065_v39 = vor.u32 %v1241_v30, %v1062_v31  ;;  %v1069_v44 = vor.u32 %v1251_v33, %v1068_v32 }
  0x1f   : > { %644 = vmatpush.bf16.msra.mxu2 %v567_v22  ;;  %657 = vmatpush.bf16.msra.mxu3 %v570_v23  ;;  %v227_v36 = vld [vmem:[%s1459_s28 + $0x1c0] sm:$0x77]  ;;  %v1232_v41 = vld [vmem:[%s1459_s28 + $0x44] sm:$0xf0]  ;;  %v1073_v45 = vor.u32 %v1242_v34, %v1070_v35  ;;  %v990_v47 = vld [vmem:[%s1459_s28 + $0x48] sm:$0xf0]  ;;  %v417_v52 = vunpack.c.l.b16 %v228_v37  ;;  %v418_v53 = vunpack.c.h.b16 %v228_v37 }
  0x20   : > { %v988_v40 = vld [vmem:[%s1459_s28] sm:$0xf]  ;;  %v415_v42 = vunpack.c.l.b16 %v227_v36  ;;  %v416_v43 = vunpack.c.h.b16 %v227_v36  ;;  %v1223_v46 = vld [vmem:[%s1459_s28 + $0x4] sm:$0xf]  ;;  %v996_v48 = vld [vmem:[%s1459_s28 + $0x8] sm:$0xf] }
  0x21   : > { %v1233_v49 = vld [vmem:[%s1459_s28 + $0x4c] sm:$0xf0]  ;;  %v1224_v50 = vld [vmem:[%s1459_s28 + $0xc] sm:$0xf]  ;;  %v998_v51 = vld [vmem:[%s1459_s28 + $0x50] sm:$0xf0]  ;;  %v989_v56 = vor.u32 %v1232_v41, %v988_v40  ;;  %v993_v57 = vor.u32 %v1223_v46, %v990_v47  ;;  %v489_v60 = vpack.c.b16 %v417_v52, %v417_v52  ;;  %v490_v61 = vpack.c.b16 %v418_v53, %v418_v53 }
  0x22   : > { %619 = vmatpush.bf16.msra.mxu0 %v1133_v24  ;;  %632 = vmatpush.bf16.msra.mxu1 %v1137_v25  ;;  %v487_v54 = vpack.c.b16 %v415_v42, %v415_v42  ;;  %v488_v55 = vpack.c.b16 %v416_v43, %v416_v43  ;;  %v997_v58 = vor.u32 %v1233_v49, %v996_v48  ;;  %v1148_v62 = vld [vmem:[%s1459_s28 + $0x130] sm:$0xf]  ;;  %v1270_v63 = vld [vmem:[%s1459_s28 + $0x174] sm:$0xf0]  ;;  %v1261_v2 = vld [vmem:[%s1459_s28 + $0x134] sm:$0xf] }
  0x23   : > { %645 = vmatpush.bf16.msra.mxu2 %v1141_v28  ;;  %658 = vmatpush.bf16.msra.mxu3 %v1145_v29  ;;  %v1001_v59 = vor.u32 %v1224_v50, %v998_v51  ;;  %v1150_v3 = vld [vmem:[%s1459_s28 + $0x178] sm:$0xf0]  ;;  %v1505_v4 = vld [vmem:[%s1718_s1] sm:$0x1]  ;;  %v1156_v5 = vld [vmem:[%s1459_s28 + $0x138] sm:$0xf]  ;;  %v1149_v11 = vor.u32 %v1270_v63, %v1148_v62 }
  0x24   : > { %v573_v0 = vsel %vm559_vm0, %v487_v54, 0  ;;  %v576_v1 = vsel %vm559_vm0, %v488_v55, 0  ;;  %v1271_v6 = vld [vmem:[%s1459_s28 + $0x17c] sm:$0xf0]  ;;  %v1262_v7 = vld [vmem:[%s1459_s28 + $0x13c] sm:$0xf]  ;;  %v1153_v12 = vor.u32 %v1261_v2, %v1150_v3 }
  0x25   : > { %v229_v8 = vld [vmem:[%s1459_s28 + $0x1d0] sm:$0x77]  ;;  %v579_v9 = vsel %vm559_vm0, %v489_v60, 0  ;;  %v582_v10 = vsel %vm559_vm0, %v490_v61, 0  ;;  %v1158_v13 = vld [vmem:[%s1459_s28 + $0x180] sm:$0xf0]  ;;  %v1157_v21 = vor.u32 %v1271_v6, %v1156_v5 }
  0x26   : > { %620 = vmatpush.bf16.msra.mxu0 %v1061_v38  ;;  %633 = vmatpush.bf16.msra.mxu1 %v1065_v39  ;;  %v1076_v14 = vld [vmem:[%s1459_s28 + $0xa0] sm:$0xf]  ;;  %v1252_v15 = vld [vmem:[%s1459_s28 + $0xe4] sm:$0xf0]  ;;  %v1243_v16 = vld [vmem:[%s1459_s28 + $0xa4] sm:$0xf]  ;;  %v419_v18 = vunpack.c.l.b16 %v229_v8  ;;  %v420_v19 = vunpack.c.h.b16 %v229_v8  ;;  %v1161_v22 = vor.u32 %v1262_v7, %v1158_v13 }
  0x27   : > { %646 = vmatpush.bf16.msra.mxu2 %v1069_v44  ;;  %659 = vmatpush.bf16.msra.mxu3 %v1073_v45  ;;  %v1078_v17 = vld [vmem:[%s1459_s28 + $0xe8] sm:$0xf0]  ;;  %v230_v20 = vld [vmem:[%s1459_s28 + $0x1d8] sm:$0x77]  ;;  %v1084_v23 = vld [vmem:[%s1459_s28 + $0xa8] sm:$0xf]  ;;  %v1077_v25 = vor.u32 %v1252_v15, %v1076_v14 }
  0x28   : > { %v1253_v24 = vld [vmem:[%s1459_s28 + $0xec] sm:$0xf0]  ;;  %v1081_v26 = vor.u32 %v1243_v16, %v1078_v17  ;;  %v1244_v27 = vld [vmem:[%s1459_s28 + $0xac] sm:$0xf]  ;;  %v1086_v28 = vld [vmem:[%s1459_s28 + $0xf0] sm:$0xf0]  ;;  %v421_v33 = vunpack.c.l.b16 %v230_v20  ;;  %v422_v34 = vunpack.c.h.b16 %v230_v20  ;;  %v491_v35 = vpack.c.b16 %v419_v18, %v419_v18 }
  0x29   : > { %v1004_v29 = vld [vmem:[%s1459_s28 + $0x10] sm:$0xf]  ;;  %v1234_v30 = vld [vmem:[%s1459_s28 + $0x54] sm:$0xf0]  ;;  %v1225_v31 = vld [vmem:[%s1459_s28 + $0x14] sm:$0xf]  ;;  %v492_v36 = vpack.c.b16 %v420_v19, %v420_v19  ;;  %v1085_v37 = vor.u32 %v1253_v24, %v1084_v23  ;;  %v1089_v38 = vor.u32 %v1244_v27, %v1086_v28 }
  0x2a   : > { %621 = vmatpush.bf16.msra.mxu0 %v989_v56  ;;  %634 = vmatpush.bf16.msra.mxu1 %v993_v57  ;;  %v1006_v32 = vld [vmem:[%s1459_s28 + $0x58] sm:$0xf0]  ;;  %v1012_v39 = vld [vmem:[%s1459_s28 + $0x18] sm:$0xf]  ;;  %v1005_v40 = vor.u32 %v1234_v30, %v1004_v29  ;;  %v1235_v42 = vld [vmem:[%s1459_s28 + $0x5c] sm:$0xf0]  ;;  %v493_v45 = vpack.c.b16 %v421_v33, %v421_v33  ;;  %v494_v46 = vpack.c.b16 %v422_v34, %v422_v34 }
  0x2b   : > { %647 = vmatpush.bf16.msra.mxu2 %v997_v58  ;;  %660 = vmatpush.bf16.msra.mxu3 %v1001_v59  ;;  %v1009_v41 = vor.u32 %v1225_v31, %v1006_v32  ;;  %v1226_v43 = vld [vmem:[%s1459_s28 + $0x1c] sm:$0xf]  ;;  %v1014_v44 = vld [vmem:[%s1459_s28 + $0x60] sm:$0xf0]  ;;  %v585_v47 = vsel %vm559_vm0, %v491_v35, 0  ;;  %v588_v48 = vsel %vm559_vm0, %v492_v36, 0  ;;  %v1013_v49 = vor.u32 %v1235_v42, %v1012_v39 }
  0x2c   : > { %v1017_v50 = vor.u32 %v1226_v43, %v1014_v44  ;;  %v1164_v51 = vld [vmem:[%s1459_s28 + $0x140] sm:$0xf]  ;;  %v1272_v52 = vld [vmem:[%s1459_s28 + $0x184] sm:$0xf0]  ;;  %v1263_v53 = vld [vmem:[%s1459_s28 + $0x144] sm:$0xf] }
  0x2d   : > { %1202 = vmatmul.msk.bf16.vlgmr.msra.gmra.mxu0 %vm555_vm1, %v1505_v4  ;;  %1203 = vmatmul.msk.bf16.vlgmr.msra.gmra.mxu1 %vm555_vm1, %v1505_v4  ;;  %v1166_v54 = vld [vmem:[%s1459_s28 + $0x188] sm:$0xf0]  ;;  %v1172_v55 = vld [vmem:[%s1459_s28 + $0x148] sm:$0xf]  ;;  %v1273_v56 = vld [vmem:[%s1459_s28 + $0x18c] sm:$0xf0]  ;;  %v1165_v62 = vor.u32 %v1272_v52, %v1164_v51 }
  0x2e   : > { %670 = vmatpush.bf16.msrb.mxu0 %v573_v0  ;;  %683 = vmatpush.bf16.msrb.mxu1 %v576_v1  ;;  %v591_v57 = vsel %vm559_vm0, %v493_v45, 0  ;;  %v594_v58 = vsel %vm559_vm0, %v494_v46, 0  ;;  %v1264_v59 = vld [vmem:[%s1459_s28 + $0x14c] sm:$0xf]  ;;  %v1174_v60 = vld [vmem:[%s1459_s28 + $0x190] sm:$0xf0]  ;;  %v1169_v63 = vor.u32 %v1263_v53, %v1166_v54  ;;  %v1173_v3 = vor.u32 %v1273_v56, %v1172_v55 }
  0x2f   : > { %1204 = vmatmul.msk.bf16.vlgmr.msra.gmra.mxu2 %vm555_vm1, %v1505_v4  ;;  %1205 = vmatmul.msk.bf16.vlgmr.msra.gmra.mxu3 %vm555_vm1, %v1505_v4  ;;  %v1092_v61 = vld [vmem:[%s1459_s28 + $0xb0] sm:$0xf]  ;;  %v1254_v0 = vld [vmem:[%s1459_s28 + $0xf4] sm:$0xf0]  ;;  %v1245_v1 = vld [vmem:[%s1459_s28 + $0xb4] sm:$0xf]  ;;  %v1177_v5 = vor.u32 %v1264_v59, %v1174_v60 }
  0x30   : > { %696 = vmatpush.bf16.msrb.mxu2 %v579_v9  ;;  %709 = vmatpush.bf16.msrb.mxu3 %v582_v10  ;;  %v231_v2 = vld [vmem:[%s1459_s28 + $0x1e0] sm:$0x77]  ;;  %v1094_v6 = vld [vmem:[%s1459_s28 + $0xf8] sm:$0xf0]  ;;  %v1100_v7 = vld [vmem:[%s1459_s28 + $0xb8] sm:$0xf]  ;;  %v1093_v14 = vor.u32 %v1254_v0, %v1092_v61 }
  0x31   : > { %v232_v8 = vld [vmem:[%s1459_s28 + $0x1e8] sm:$0x77]  ;;  %v1255_v9 = vld [vmem:[%s1459_s28 + $0xfc] sm:$0xf0]  ;;  %v1246_v10 = vld [vmem:[%s1459_s28 + $0xbc] sm:$0xf]  ;;  %v424_v13 = vunpack.c.h.b16 %v231_v2  ;;  %v1097_v15 = vor.u32 %v1245_v1, %v1094_v6 }
  0x32   : > { %671 = vmatpush.bf16.msrb.mxu0 %v1149_v11  ;;  %684 = vmatpush.bf16.msrb.mxu1 %v1153_v12  ;;  %v1102_v11 = vld [vmem:[%s1459_s28 + $0x100] sm:$0xf0]  ;;  %v423_v12 = vunpack.c.l.b16 %v231_v2  ;;  %v1020_v16 = vld [vmem:[%s1459_s28 + $0x20] sm:$0xf]  ;;  %v1236_v17 = vld [vmem:[%s1459_s28 + $0x64] sm:$0xf0]  ;;  %v425_v18 = vunpack.c.l.b16 %v232_v8  ;;  %v426_v19 = vunpack.c.h.b16 %v232_v8  ;;  %v1101_v20 = vor.u32 %v1255_v9, %v1100_v7 }
  0x33   : > { %v1022_v23 = vld [vmem:[%s1459_s28 + $0x68] sm:$0xf0]  ;;  %v1028_v24 = vld [vmem:[%s1459_s28 + $0x28] sm:$0xf]  ;;  %v1030_v27 = vld [vmem:[%s1459_s28 + $0x70] sm:$0xf0]  ;;  %v1021_v28 = vor.u32 %v1236_v17, %v1020_v16  ;;  %v496_v30 = vpack.c.b16 %v424_v13, %v424_v13 }
  0x34   : > { %697 = vmatpush.bf16.msrb.mxu2 %v1157_v21  ;;  %710 = vmatpush.bf16.msrb.mxu3 %v1161_v22  ;;  %v1105_v21 = vor.u32 %v1246_v10, %v1102_v11  ;;  %v1227_v22 = vld [vmem:[%s1459_s28 + $0x24] sm:$0xf]  ;;  %v495_v29 = vpack.c.b16 %v423_v12, %v423_v12  ;;  %v497_v32 = vpack.c.b16 %v425_v18, %v425_v18  ;;  %v1265_v42 = vld [vmem:[%s1459_s28 + $0x154] sm:$0xf]  ;;  %v1182_v43 = vld [vmem:[%s1459_s28 + $0x198] sm:$0xf0] }
  0x35   : > { %v1025_v31 = vor.u32 %v1227_v22, %v1022_v23  ;;  %v498_v33 = vpack.c.b16 %v426_v19, %v426_v19  ;;  %v1188_v44 = vld [vmem:[%s1459_s28 + $0x158] sm:$0xf]  ;;  %v1275_v45 = vld [vmem:[%s1459_s28 + $0x19c] sm:$0xf0]  ;;  %v1266_v46 = vld [vmem:[%s1459_s28 + $0x15c] sm:$0xf] }
  0x36   : > { %672 = vmatpush.bf16.msrb.mxu0 %v1077_v25  ;;  %685 = vmatpush.bf16.msrb.mxu1 %v1081_v26  ;;  %v1237_v25 = vld [vmem:[%s1459_s28 + $0x6c] sm:$0xf0]  ;;  %v1228_v26 = vld [vmem:[%s1459_s28 + $0x2c] sm:$0xf]  ;;  %v597_v36 = vsel %vm559_vm0, %v495_v29, 0  ;;  %v1189_v53 = vor.u32 %v1275_v45, %v1188_v44 }
  0x37   : > { %v1029_v34 = vor.u32 %v1237_v25, %v1028_v24  ;;  %v1033_v35 = vor.u32 %v1228_v26, %v1030_v27  ;;  %v606_v39 = vsel %vm559_vm0, %v498_v33, 0  ;;  %v1256_v51 = vld [vmem:[%s1459_s28 + $0x104] sm:$0xf0]  ;;  %v233_v52 = vld [vmem:[%s1459_s28 + $0x1f0] sm:$0x77] }
  0x38   : > { %698 = vmatpush.bf16.msrb.mxu2 %v1085_v37  ;;  %711 = vmatpush.bf16.msrb.mxu3 %v1089_v38  ;;  %v600_v37 = vsel %vm559_vm0, %v496_v30, 0  ;;  %v603_v38 = vsel %vm559_vm0, %v497_v32, 0  ;;  %v1247_v55 = vld [vmem:[%s1459_s28 + $0xc4] sm:$0xf]  ;;  %v1110_v56 = vld [vmem:[%s1459_s28 + $0x108] sm:$0xf0]  ;;  %v427_v61 = vunpack.c.l.b16 %v233_v52 }
  0x39   : > { %v1248_v59 = vld [vmem:[%s1459_s28 + $0xcc] sm:$0xf]  ;;  %v1118_v60 = vld [vmem:[%s1459_s28 + $0x110] sm:$0xf0]  ;;  %v1113_v0 = vor.u32 %v1247_v55, %v1110_v56  ;;  %v1036_v1 = vld [vmem:[%s1459_s28 + $0x30] sm:$0xf] }
  0x3a   : > { %673 = vmatpush.bf16.msrb.mxu0 %v1005_v40  ;;  %686 = vmatpush.bf16.msrb.mxu1 %v1009_v41  ;;  %v1180_v40 = vld [vmem:[%s1459_s28 + $0x150] sm:$0xf]  ;;  %v1274_v41 = vld [vmem:[%s1459_s28 + $0x194] sm:$0xf0]  ;;  %v1229_v6 = vld [vmem:[%s1459_s28 + $0x34] sm:$0xf]  ;;  %v499_v12 = vpack.c.b16 %v427_v61, %v427_v61 }
  0x3b   : > { %v1238_v2 = vld [vmem:[%s1459_s28 + $0x74] sm:$0xf0]  ;;  %v1038_v7 = vld [vmem:[%s1459_s28 + $0x78] sm:$0xf0]  ;;  %v1239_v9 = vld [vmem:[%s1459_s28 + $0x7c] sm:$0xf0] }
  0x3c   : > { %699 = vmatpush.bf16.msrb.mxu2 %v1013_v49  ;;  %712 = vmatpush.bf16.msrb.mxu3 %v1017_v50  ;;  %v1185_v49 = vor.u32 %v1265_v42, %v1182_v43  ;;  %v1108_v50 = vld [vmem:[%s1459_s28 + $0xc0] sm:$0xf]  ;;  %v1044_v8 = vld [vmem:[%s1459_s28 + $0x38] sm:$0xf]  ;;  %v1230_v10 = vld [vmem:[%s1459_s28 + $0x3c] sm:$0xf] }
  0x3d   : > { %1206 = vmatmul.msk.bf16.vlgmr.msrb.gmra.mxu0 %vm555_vm1, %v1505_v4  ;;  %1207 = vmatmul.msk.bf16.vlgmr.msrb.gmra.mxu1 %vm555_vm1, %v1505_v4  ;;  %v1046_v11 = vld [vmem:[%s1459_s28 + $0x80] sm:$0xf0]  ;;  %v1045_v16 = vor.u32 %v1239_v9, %v1044_v8  ;;  %v609_v18 = vsel %vm559_vm0, %v499_v12, 0  ;;  %v1198_v23 = vld [vmem:[%s1459_s28 + $0x1a8] sm:$0xf0] }
  0x3e   : > { %722 = vmatpush.bf16.msra.mxu0 %v585_v47  ;;  %735 = vmatpush.bf16.msra.mxu1 %v588_v48  ;;  %v1190_v47 = vld [vmem:[%s1459_s28 + $0x1a0] sm:$0xf0]  ;;  %v1181_v48 = vor.u32 %v1274_v41, %v1180_v40  ;;  %v1049_v17 = vor.u32 %v1230_v10, %v1046_v11  ;;  %v1124_v26 = vld [vmem:[%s1459_s28 + $0xd0] sm:$0xf]  ;;  %v1258_v27 = vld [vmem:[%s1459_s28 + $0x114] sm:$0xf0] }
  0x3f   : > { %1208 = vmatmul.msk.bf16.vlgmr.msrb.gmra.mxu2 %vm555_vm1, %v1505_v4  ;;  %1209 = vmatmul.msk.bf16.vlgmr.msrb.gmra.mxu3 %vm555_vm1, %v1505_v4  ;;  %v1193_v54 = vor.u32 %v1266_v46, %v1190_v47  ;;  %v1267_v22 = vld [vmem:[%s1459_s28 + $0x164] sm:$0xf]  ;;  %v1126_v29 = vld [vmem:[%s1459_s28 + $0x118] sm:$0xf0]  ;;  %v1125_v30 = vor.u32 %v1258_v27, %v1124_v26  ;;  %v1052_v32 = vld [vmem:[%s1459_s28 + $0x40] sm:$0xf] }
  0x40   : > { %748 = vmatpush.bf16.msra.mxu2 %v591_v57  ;;  %761 = vmatpush.bf16.msra.mxu3 %v594_v58  ;;  %v1116_v57 = vld [vmem:[%s1459_s28 + $0xc8] sm:$0xf]  ;;  %v1257_v58 = vld [vmem:[%s1459_s28 + $0x10c] sm:$0xf0]  ;;  %v1201_v25 = vor.u32 %v1267_v22, %v1198_v23 }
  0x41   : > { %v1240_v33 = vld [vmem:[%s1459_s28 + $0x84] sm:$0xf0] }
  0x42   : > { %723 = vmatpush.bf16.msra.mxu0 %v1165_v62  ;;  %736 = vmatpush.bf16.msra.mxu1 %v1169_v63  ;;  %v428_v62 = vunpack.c.h.b16 %v233_v52  ;;  %v1109_v63 = vor.u32 %v1256_v51, %v1108_v50 }
  0x44   : > { %749 = vmatpush.bf16.msra.mxu2 %v1173_v3  ;;  %762 = vmatpush.bf16.msra.mxu3 %v1177_v5  ;;  %v1117_v3 = vor.u32 %v1257_v58, %v1116_v57  ;;  %v1121_v5 = vor.u32 %v1248_v59, %v1118_v60  ;;  %v500_v13 = vpack.c.b16 %v428_v62, %v428_v62 }
  0x46   : > { %724 = vmatpush.bf16.msra.mxu0 %v1093_v14  ;;  %737 = vmatpush.bf16.msra.mxu1 %v1097_v15  ;;  %v1037_v14 = vor.u32 %v1238_v2, %v1036_v1  ;;  %v1041_v15 = vor.u32 %v1229_v6, %v1038_v7  ;;  %v612_v19 = vsel %vm559_vm0, %v500_v13, 0 }
  0x48   : > { %750 = vmatpush.bf16.msra.mxu2 %v1101_v20  ;;  %763 = vmatpush.bf16.msra.mxu3 %v1105_v21  ;;  %v1196_v20 = vld [vmem:[%s1459_s28 + $0x160] sm:$0xf]  ;;  %v1276_v21 = vld [vmem:[%s1459_s28 + $0x1a4] sm:$0xf0] }
  0x49   : > { %v1197_v24 = vor.u32 %v1276_v21, %v1196_v20 }
  0x4a   : > { %725 = vmatpush.bf16.msra.mxu0 %v1021_v28  ;;  %738 = vmatpush.bf16.msra.mxu1 %v1025_v31  ;;  %v1249_v28 = vld [vmem:[%s1459_s28 + $0xd4] sm:$0xf] }
  0x4b   : > { %v1129_v31 = vor.u32 %v1249_v28, %v1126_v29 }
  0x4c   : > { %751 = vmatpush.bf16.msra.mxu2 %v1029_v34  ;;  %764 = vmatpush.bf16.msra.mxu3 %v1033_v35  ;;  %v1231_v34 = vld [vmem:[%s1459_s28 + $0x44] sm:$0xf]  ;;  %v1054_v35 = vld [vmem:[%s1459_s28 + $0x88] sm:$0xf0]  ;;  %s1341_s28 = scalar_lea.hbm %s1720_s3, 72 }
  0x4d   : > { %1210 = vmatmul.msk.bf16.vlgmr.msra.gmra.mxu0 %vm555_vm1, %v1505_v4  ;;  %1211 = vmatmul.msk.bf16.vlgmr.msra.gmra.mxu1 %vm555_vm1, %v1505_v4  ;;  %p1343_p1 = scmp.lt.s32.totalorder %s1341_s28, %s1337_s25 }
  0x4e   : > { %774 = vmatpush.bf16.msrb.mxu0 %v597_v36  ;;  %787 = vmatpush.bf16.msrb.mxu1 %v600_v37  ;;  %v1053_v36 = vor.u32 %v1240_v33, %v1052_v32  ;;  %v1057_v37 = vor.u32 %v1231_v34, %v1054_v35 }
  0x4f   : > { %1212 = vmatmul.msk.bf16.vlgmr.msra.gmra.mxu2 %vm555_vm1, %v1505_v4  ;;  %1213 = vmatmul.msk.bf16.vlgmr.msra.gmra.mxu3 %vm555_vm1, %v1505_v4  ;;  %p1344_p2 = por %p1343_p1, %p1342_p0 }
  0x50   : > { %800 = vmatpush.bf16.msrb.mxu2 %v603_v38  ;;  %813 = vmatpush.bf16.msrb.mxu3 %v606_v39 }
  0x51   : > { %p1345_p3 = pnand %p1344_p2, %p1340_p13 }
  0x52   : > { %775 = vmatpush.bf16.msrb.mxu0 %v1181_v48  ;;  %788 = vmatpush.bf16.msrb.mxu1 %v1185_v49 }
  0x54   : > { %801 = vmatpush.bf16.msrb.mxu2 %v1189_v53  ;;  %814 = vmatpush.bf16.msrb.mxu3 %v1193_v54 }
  0x56   : > { %776 = vmatpush.bf16.msrb.mxu0 %v1109_v63  ;;  %789 = vmatpush.bf16.msrb.mxu1 %v1113_v0 }
  0x58   : > { %802 = vmatpush.bf16.msrb.mxu2 %v1117_v3  ;;  %815 = vmatpush.bf16.msrb.mxu3 %v1121_v5 }
  0x5a   : > { %777 = vmatpush.bf16.msrb.mxu0 %v1037_v14  ;;  %790 = vmatpush.bf16.msrb.mxu1 %v1041_v15 }
  0x5c   : > { %803 = vmatpush.bf16.msrb.mxu2 %v1045_v16  ;;  %816 = vmatpush.bf16.msrb.mxu3 %v1049_v17 }
  0x5d   : > { %1214 = vmatmul.msk.bf16.vlgmr.msrb.gmra.mxu0 %vm555_vm1, %v1505_v4  ;;  %1215 = vmatmul.msk.bf16.vlgmr.msrb.gmra.mxu1 %vm555_vm1, %v1505_v4 }
  0x5e   : > { %826 = vmatpush.bf16.msra.mxu0 %v609_v18  ;;  %839 = vmatpush.bf16.msra.mxu1 %v612_v19 }
  0x5f   : > { %1216 = vmatmul.msk.bf16.vlgmr.msrb.gmra.mxu2 %vm555_vm1, %v1505_v4  ;;  %1217 = vmatmul.msk.bf16.vlgmr.msrb.gmra.mxu3 %vm555_vm1, %v1505_v4 }
  0x62   : > { %827 = vmatpush.bf16.msra.mxu0 %v1197_v24  ;;  %840 = vmatpush.bf16.msra.mxu1 %v1201_v25 }
  0x66   : > { %828 = vmatpush.bf16.msra.mxu0 %v1125_v30  ;;  %841 = vmatpush.bf16.msra.mxu1 %v1129_v31 }
  0x6a   : > { %829 = vmatpush.bf16.msra.mxu0 %v1053_v36  ;;  %842 = vmatpush.bf16.msra.mxu1 %v1057_v37 }
  0x6d   : > { %1218 = vmatmul.msk.bf16.vlgmr.msra.gmra.mxu0 %vm555_vm1, %v1505_v4  ;;  %1219 = vmatmul.msk.bf16.vlgmr.msra.gmra.mxu1 %vm555_vm1, %v1505_v4 }
  0x87   : > { %v1640_v40 = vpop.permute.xlu0 %237 }
  0xaa   : > { %v623_v38 = vpop.f32.mrf.mxu0  ;;  %v636_v39 = vpop.f32.mrf.mxu1 }
  0xab   : > { %v637_v41 = vadd.f32 %v636_v39, %v1640_v40  ;;  %v624_v4 = vadd.f32 %v623_v38, %v1640_v40 }
  0xad   : > { %v866_v44 = vrot.slane %v637_v41, 6 }
  0xaf   : > { %v880_v51 = vsel %vm879_vm2, %v624_v4, %v866_v44 }
  0xb2   : > { %v649_v42 = vpop.f32.mrf.mxu2  ;;  %v662_v43 = vpop.f32.mrf.mxu3 }
  0xb3   : > { %v650_v45 = vadd.f32 %v649_v42, %v1640_v40  ;;  %v663_v46 = vadd.f32 %v662_v43, %v1640_v40  ;;  %v625_v47 = vpop.f32.mrf.mxu0  ;;  %v638_v48 = vpop.f32.mrf.mxu1 }
  0xb5   : > { %v867_v49 = vrot.slane %v650_v45, 4  ;;  %v868_v50 = vrot.slane %v663_v46, 2 }
  0xb7   : > { %v882_v52 = vsel %vm881_vm3, %v867_v49, %v868_v50 }
  0xb8   : > { %v884_v53 = vsel %vm883_vm4, %v880_v51, %v882_v52 }
  0xb9   : > { %900 = vst [vmem:[%s1652_s8] sm:$0xff] %v884_v53 }
  0xba   : > { %v651_v54 = vpop.f32.mrf.mxu2  ;;  %v664_v55 = vpop.f32.mrf.mxu3 }
  0xbb   : > { %v675_v56 = vpop.f32.mrf.mxu0  ;;  %v688_v57 = vpop.f32.mrf.mxu1 }
  0xbc   : > { %v689_v58 = vadd.f32 %v688_v57, %v1640_v40  ;;  %v676_v2 = vadd.f32 %v675_v56, %v1640_v40 }
  0xbe   : > { %v869_v61 = vrot.slane %v689_v58, 6 }
  0xc0   : > { %v885_v6 = vsel %vm879_vm2, %v676_v2, %v869_v61 }
  0xc2   : > { %v701_v59 = vpop.f32.mrf.mxu2  ;;  %v714_v60 = vpop.f32.mrf.mxu3 }
  0xc3   : > { %v702_v62 = vadd.f32 %v701_v59, %v1640_v40  ;;  %v715_v63 = vadd.f32 %v714_v60, %v1640_v40  ;;  %v677_v0 = vpop.f32.mrf.mxu0  ;;  %v690_v1 = vpop.f32.mrf.mxu1 }
  0xc5   : > { %v870_v3 = vrot.slane %v702_v62, 4  ;;  %v871_v5 = vrot.slane %v715_v63, 2 }
  0xc7   : > { %v886_v7 = vsel %vm881_vm3, %v870_v3, %v871_v5 }
  0xc8   : > { %v887_v8 = vsel %vm883_vm4, %v885_v6, %v886_v7 }
  0xc9   : > { %901 = vst [vmem:[%s1652_s8 + $0x8] sm:$0xff] %v887_v8 }
  0xca   : > { %v703_v9 = vpop.f32.mrf.mxu2  ;;  %v716_v10 = vpop.f32.mrf.mxu3 }
  0xcb   : > { %v727_v11 = vpop.f32.mrf.mxu0  ;;  %v740_v12 = vpop.f32.mrf.mxu1 }
  0xcc   : > { %v741_v13 = vadd.f32 %v740_v12, %v1640_v40  ;;  %v728_v21 = vadd.f32 %v727_v11, %v1640_v40 }
  0xce   : > { %v872_v16 = vrot.slane %v741_v13, 6 }
  0xd0   : > { %v888_v24 = vsel %vm879_vm2, %v728_v21, %v872_v16 }
  0xd2   : > { %v753_v14 = vpop.f32.mrf.mxu2  ;;  %v766_v15 = vpop.f32.mrf.mxu3 }
  0xd3   : > { %v754_v17 = vadd.f32 %v753_v14, %v1640_v40  ;;  %v767_v18 = vadd.f32 %v766_v15, %v1640_v40  ;;  %v729_v19 = vpop.f32.mrf.mxu0  ;;  %v742_v20 = vpop.f32.mrf.mxu1 }
  0xd5   : > { %v873_v22 = vrot.slane %v754_v17, 4  ;;  %v874_v23 = vrot.slane %v767_v18, 2 }
  0xd7   : > { %v889_v25 = vsel %vm881_vm3, %v873_v22, %v874_v23 }
  0xd8   : > { %v890_v26 = vsel %vm883_vm4, %v888_v24, %v889_v25 }
  0xd9   : > { %902 = vst [vmem:[%s1652_s8 + $0x10] sm:$0xff] %v890_v26 }
  0xda   : > { %v755_v27 = vpop.f32.mrf.mxu2  ;;  %v768_v28 = vpop.f32.mrf.mxu3 }
  0xdb   : > { %v779_v29 = vpop.f32.mrf.mxu0  ;;  %v792_v30 = vpop.f32.mrf.mxu1 }
  0xdc   : > { %v793_v31 = vadd.f32 %v792_v30, %v1640_v40  ;;  %v780_v39 = vadd.f32 %v779_v29, %v1640_v40 }
  0xde   : > { %v875_v34 = vrot.slane %v793_v31, 6 }
  0xe0   : > { %v891_v43 = vsel %vm879_vm2, %v780_v39, %v875_v34 }
  0xe2   : > { %v805_v32 = vpop.f32.mrf.mxu2  ;;  %v818_v33 = vpop.f32.mrf.mxu3 }
  0xe3   : > { %v806_v35 = vadd.f32 %v805_v32, %v1640_v40  ;;  %v819_v36 = vadd.f32 %v818_v33, %v1640_v40  ;;  %v781_v37 = vpop.f32.mrf.mxu0  ;;  %v794_v38 = vpop.f32.mrf.mxu1 }
  0xe5   : > { %v876_v41 = vrot.slane %v806_v35, 4  ;;  %v877_v42 = vrot.slane %v819_v36, 2 }
  0xe7   : > { %v892_v44 = vsel %vm881_vm3, %v876_v41, %v877_v42 }
  0xe8   : > { %v893_v45 = vsel %vm883_vm4, %v891_v43, %v892_v44 }
  0xe9   : > { %903 = vst [vmem:[%s1652_s8 + $0x18] sm:$0xff] %v893_v45 }
  0xea   : > { %v807_v46 = vpop.f32.mrf.mxu2  ;;  %v820_v47 = vpop.f32.mrf.mxu3 }
  0xeb   : > { %v831_v48 = vpop.f32.mrf.mxu0  ;;  %v844_v4 = vpop.f32.mrf.mxu1 }
  0xec   : > { %v845_v49 = vadd.f32 %v844_v4, %v1640_v40  ;;  %v832_v50 = vadd.f32 %v831_v48, %v1640_v40 }
  0xee   : > { %v878_v51 = vrot.slane %v845_v49, 6 }
  0xf0   : > { %v894_v52 = vsel %vm879_vm2, %v832_v50, %v878_v51 }
  0xf1   : > { %904 = vst [vmem:[%s1652_s8 + $0x20] sm:$0xf] %v894_v52 }
  0xf2   : > { %1348 = shalt.err (!%p1345_p3)
}
  0xf3   : > { %1280 = dma.vmem_to_hbm [thread:$0]  (%p1444_p5), %s920_s16, 576, %s922_s19, %s906_s20   ;;  %v833_v40 = vpop.f32.mrf.mxu0  ;;  %v846_v53 = vpop.f32.mrf.mxu1 }
  0xf4 PF: > { %p1286_p4 = scmp.ge.s32.totalorder %s1383_s15, 2  ;;  %s933_s4 = sand.u32 1, %s1371_s12  }
  0xf5   : > { %s934_s5 = scalar_lea.sflag [#allocation3], %s933_s4 }
  0xf6   : > { %p1283_p7 = pnand %p1286_p4, %p1448_p6 }
  0xf8   : > { %p1284_p8 = pneg %p1283_p7 }
  0xfa   : > { %1366 = dma.done.wait (%p1284_p8), %s934_s5, 576  }
  0xfb   : > { %1368 = vsyncadd (%p1284_p8), %s934_s5, 4294966720  ;;  %p13_p5 = scmp.ge.s32.totalorder %s1431_s18, 4   ;;  %s1723_s12 = smov %s1375_s13 }
  0xfc   : > { %s1724_s13 = smov %s1379_s14  ;;  %s1725_s14 = smov %s1442_s21 }
  0xfd   : > { %s1726_s15 = smov %s1431_s18  ;;  %15 = sbr.rel (!%p13_p5) target bundleno = 3 (0x3), region = 67 }
 0x102   :  { %940 = vsyncpa [#allocation3], 1 }
 0x103   :  { %942 = vsyncpa [#allocation3 + $0x1], 1 }

</bundles_post_ra>
